<compile_context>
chip_gen: v6e
topology: v6e:2x2x1
jax: 0.10.0
libtpu: 0.0.40
codegen_flags: <defaults>
</compile_context>

<pallas_src>
import functools

import jax
import jax.numpy as jnp
from jax import lax
from jax.experimental import pallas as pl
from jax.experimental.pallas import tpu as pltpu


# ---------------------------------------------------------------------------
# Kernels
# ---------------------------------------------------------------------------
def _mean_kernel(x_ref, mean_ref, *, inv_s, valid_s, needs_mask):
    """Per-row mean over the spatial axis, accumulated across spatial tiles."""
    s = pl.program_id(1)

    @pl.when(s == 0)
    def _init():
        mean_ref[...] = jnp.zeros_like(mean_ref)

    x = x_ref[...].astype(jnp.float32)
    if needs_mask:
        ts = x.shape[-1]
        # Global-column mask for the (clamped) partial tail tile.  Use a
        # select (NOT a multiply) so stale VMEM garbage / NaNs become exact 0.
        col = lax.broadcasted_iota(jnp.int32, (1, ts), 1)
        rem = valid_s - s * ts
        x = jnp.where(col < rem, x, 0.0)

    mean_ref[...] += jnp.sum(x, axis=-1, keepdims=True)

    @pl.when(s == pl.num_programs(1) - 1)
    def _fin():
        mean_ref[...] = mean_ref[...] * inv_s


def _gate_kernel(shift_ref, w_ref, gate_ref, *, k_size):
    """gate = sigmoid(sum_j w[j] * shifted_mean[j]) — one-shot, tiny."""
    y = w_ref[0] * shift_ref[0]                       # (B, C) f32
    for j in range(1, k_size):                        # k is small, static unroll
        y = y + w_ref[j] * shift_ref[j]
    gate_ref[...] = jax.nn.sigmoid(y).astype(gate_ref.dtype)


def _scale_kernel(gate_ref, x_ref, o_ref):
    """out = x * gate (native dtype; gate broadcast along the spatial axis)."""
    o_ref[...] = x_ref[...] * gate_ref[...]


# ---------------------------------------------------------------------------
# Tiling helpers
# ---------------------------------------------------------------------------
def _vmem_budget_bytes():
    # Physical per-core VMEM: 128 MiB (v5e/v6e), 64 MiB (v7x).  Leave ~16 MiB
    # compiler headroom and cap at 96 MiB; raise the scoped limit to this
    # value (defaults are only 16/32 MiB).
    try:
        phys = int(pltpu.get_tpu_info().vmem_capacity_bytes)
    except Exception:
        phys = 64 * 1024 * 1024
    return max(32 * 1024 * 1024, min(phys - 16 * 1024 * 1024, 96 * 1024 * 1024))


def _pick_row_block(R):
    """Multiple-of-8 divisor of R, capped so the row axis has several blocks.

    Stage 1's spatial axis is a reduction ("arbitrary") and cannot be split
    across TensorCores, so the row axis must have >1 block (ideally >=8) for
    megacore sharding on v7x.
    """
    if R % 8 != 0:
        # Single block; still correct but sublane-padded.  Rare for real nets.
        return R
    cap = max(8, min(256, (R // 64) * 8))     # aim for >= 8 row blocks
    for rb in range(cap, 7, -8):
        if R % rb == 0:
            return rb
    return 8


def _round_down_128(x):
    return max(128, (x // 128) * 128)


# ---------------------------------------------------------------------------
# Wrapper
# ---------------------------------------------------------------------------
def eca_pallas(x, conv_weight, *, donate_x=False):
    """x: (B, C, D, H, W); conv_weight: (1, 1, k, k) as in nn.Conv2d(1, 1, k)."""
    B, C, D, H, W = x.shape
    k = conv_weight.shape[-1]
    half = (k - 1) // 2
    # Only the middle kernel row of the 2-D conv sees data (input height 1 plus
    # zero padding), so its middle row is the exact 1-D channel-conv kernel.
    w_mid = conv_weight[0, 0, half, :].astype(jnp.float32)       # (k,)

    R = B * C
    S = D * H * W
    x2d = x.reshape(R, S)                 # contiguous reshape: no data movement

    budget = _vmem_budget_bytes()
    usable = int(budget * 0.8)            # keep headroom under the scoped limit
    rb = _pick_row_block(R)
    it = x.dtype.itemsize                 # real itemsize (tiles live in native dtype)
    s_pad = -(-S // 128) * 128            # lane-dense upper bound for a tile

    # Stage 1: one double-buffered (rb, ts1) input stream + ~2 f32 compute
    # temporaries (cast / mask).  Output (rb, 1) is resident -> negligible.
    bpe1 = 2 * it + 8
    ts1 = min(s_pad, _round_down_128(usable // (bpe1 * rb)))
    grid1 = (R // rb, pl.cdiv(S, ts1))

    # Stage 2: double-buffered input + output streams + ~2 native-dtype temps.
    bpe2 = 6 * it
    ts2 = min(s_pad, _round_down_128(usable // (bpe2 * rb)))
    grid2 = (R // rb, pl.cdiv(S, ts2))

    # ---- Stage 1: per-(b, c) spatial mean -------------------------------
    means = pl.pallas_call(
        functools.partial(_mean_kernel, inv_s=1.0 / S, valid_s=S,
                          needs_mask=(S % ts1 != 0)),
        out_shape=jax.ShapeDtypeStruct((R, 1), jnp.float32),
        grid=grid1,
        in_specs=[pl.BlockSpec((rb, ts1), lambda r, s: (r, s))],
        out_specs=pl.BlockSpec((rb, 1), lambda r, s: (r, 0)),
        compiler_params=pltpu.CompilerParams(
            dimension_semantics=("parallel", "arbitrary"),
            vmem_limit_bytes=int(budget)),
    )(x2d)

    # ---- Gate: 1-D channel conv + sigmoid (one-shot) ---------------------
    # Stage the k zero-padded shifted windows of the (B, C) mean in the
    # wrapper (O(k*B*C) bytes of layout plumbing).  This keeps the kernel free
    # of a CxC band matrix / unaligned lane slices, so it is safe for any C on
    # every generation (incl. v5e's 16 MiB default scoped VMEM).
    mean_bc = means.reshape(B, C)
    mpad = jnp.pad(mean_bc, ((0, 0), (half, half)))
    shifted = jnp.stack([mpad[:, j:j + C] for j in range(k)])    # (k, B, C) f32

    gate = pl.pallas_call(
        functools.partial(_gate_kernel, k_size=k),
        out_shape=jax.ShapeDtypeStruct((B, C), x.dtype),
        grid=(1,),
        in_specs=[
            pl.BlockSpec((k, B, C), lambda i: (0, 0, 0)),
            pl.BlockSpec(memory_space=pltpu.MemorySpace.SMEM),   # (k,) weights
        ],
        out_specs=pl.BlockSpec((B, C), lambda i: (0, 0)),
        compiler_params=pltpu.CompilerParams(
            dimension_semantics=("arbitrary",),
            vmem_limit_bytes=int(budget)),
    )(shifted, w_mid)

    # ---- Stage 2: out = x * gate -----------------------------------------
    out2d = pl.pallas_call(
        _scale_kernel,
        out_shape=jax.ShapeDtypeStruct((R, S), x.dtype),
        grid=grid2,
        in_specs=[
            pl.BlockSpec((rb, 1), lambda r, s: (r, 0)),
            pl.BlockSpec((rb, ts2), lambda r, s: (r, s)),
        ],
        out_specs=pl.BlockSpec((rb, ts2), lambda r, s: (r, s)),
        input_output_aliases=({1: 0} if donate_x else {}),
        compiler_params=pltpu.CompilerParams(
            dimension_semantics=("parallel", "parallel"),
            vmem_limit_bytes=int(budget)),
    )(gate.reshape(R, 1), x2d)

    return out2d.reshape(B, C, D, H, W)


# ---------------------------------------------------------------------------
# Pure-JAX reference (matches the PyTorch forward)
# ---------------------------------------------------------------------------
def eca_reference(x, conv_weight):
    B, C, D, H, W = x.shape
    k = conv_weight.shape[-1]
    half = (k - 1) // 2
    m = x.mean(axis=(2, 3, 4))                          # (B, C)
    w_mid = conv_weight[0, 0, half, :]
    mp = jnp.pad(m, ((0, 0), (half, half)))
    y = sum(w_mid[j] * mp[:, j:j + C] for j in range(k))
    y = jax.nn.sigmoid(y)
    return x * y[:, :, None, None, None]


if __name__ == "__main__":
    key = jax.random.PRNGKey(0)
    kx, kw = jax.random.split(key)

    # S = 4*6*10 = 240 (not a multiple of 128) -> exercises the masked tail.
    B, C, D, H, W = 2, 4, 4, 6, 10
    k_size = 3
    x = jax.random.normal(kx, (B, C, D, H, W), dtype=jnp.float32)

    # Deterministic Conv2d(1, 1, k_size, bias=False) weight, shape (1, 1, k, k)
    # (kaiming-uniform-style bound, seeded).
    fan_in = 1 * k_size * k_size
    bound = 1.0 / (fan_in ** 0.5)
    conv_w = jax.random.uniform(kw, (1, 1, k_size, k_size), jnp.float32, -bound, bound)

    out = jax.block_until_ready(eca_pallas(x, conv_w))

    ref = eca_reference(x, conv_w)
    assert out.shape == x.shape and out.dtype == x.dtype
    assert jnp.allclose(out, ref, atol=1e-5, rtol=1e-5), float(jnp.max(jnp.abs(out - ref)))
    print("KERNEL_OK")
</pallas_src>

<mosaic_0001>
module attributes {stable_mosaic.version = 11 : i64} {
  func.func @_mean_kernel(%arg0: i32, %arg1: i32, %arg2: memref<8x256xf32, #tpu.memory_space<vmem>>, %arg3: memref<8x1xf32, #tpu.memory_space<vmem>>) attributes {dimension_semantics = [#tpu.dimension_semantics<parallel>, #tpu.dimension_semantics<arbitrary>], iteration_bounds = array<i64: 1, 1>, scalar_prefetch = 0 : i64, scratch_operands = 0 : i64, tpu.core_type = #tpu.core_type<tc>, window_params = [{transform_indices = @transform_0, window_bounds = array<i64: 8, 256>}, {transform_indices = @transform_1, window_bounds = array<i64: 8, 1>}]} {
    %c0_i32 = arith.constant 0 : i32
    %0 = arith.cmpi eq, %arg1, %c0_i32 : i32
    %1 = arith.extui %0 : i1 to i32
    %c0_i32_0 = arith.constant 0 : i32
    %2 = arith.cmpi ne, %1, %c0_i32_0 : i32
    scf.if %2 {
      %cst_9 = arith.constant 0.000000e+00 : f32
      %21 = vector.broadcast %cst_9 : f32 to vector<8x1xf32>
      %c0_10 = arith.constant 0 : index
      %c0_11 = arith.constant 0 : index
      %22 = vector.load %arg3[%c0_10, %c0_11] : memref<8x1xf32, #tpu.memory_space<vmem>>, vector<8x1xf32>
      tpu.vector_store %arg3[%c0_10, %c0_11], %21 {strides = array<i32>} : memref<8x1xf32, #tpu.memory_space<vmem>>, vector<8x1xf32>,
    } else {
    }
    %c0 = arith.constant 0 : index
    %c0_1 = arith.constant 0 : index
    %3 = vector.load %arg2[%c0, %c0_1] : memref<8x256xf32, #tpu.memory_space<vmem>>, vector<8x256xf32>
    %4 = tpu.iota {dimensions = array<i32: 1>} : vector<1x256xi32>
    %c256_i32 = arith.constant 256 : i32
    %5 = arith.muli %arg1, %c256_i32 : i32
    %c240_i32 = arith.constant 240 : i32
    %6 = arith.subi %c240_i32, %5 : i32
    %7 = vector.broadcast %6 : i32 to vector<1x256xi32>
    %8 = arith.cmpi slt, %4, %7 : vector<1x256xi32>
    %cst = arith.constant 0.000000e+00 : f32
    %9 = vector.shape_cast %8 : vector<1x256xi1> to vector<1x256xi1>
    %10 = vector.broadcast %9 : vector<1x256xi1> to vector<8x256xi1>
    %11 = vector.broadcast %cst : f32 to vector<8x256xf32>
    %12 = arith.select %10, %3, %11 : vector<8x256xi1>, vector<8x256xf32>
    %c0_2 = arith.constant 0 : index
    %c0_3 = arith.constant 0 : index
    %13 = vector.load %arg3[%c0_2, %c0_3] : memref<8x1xf32, #tpu.memory_space<vmem>>, vector<8x1xf32>
    %cst_4 = arith.constant dense<0.000000e+00> : vector<8xf32>
    %14 = vector.multi_reduction <add>, %12, %cst_4 [1] : vector<8x256xf32> to vector<8xf32>
    %15 = vector.shape_cast %14 : vector<8xf32> to vector<8x1xf32>
    %16 = arith.addf %13, %15 : vector<8x1xf32>
    %c0_5 = arith.constant 0 : index
    %c0_6 = arith.constant 0 : index
    %17 = vector.load %arg3[%c0_5, %c0_6] : memref<8x1xf32, #tpu.memory_space<vmem>>, vector<8x1xf32>
    tpu.vector_store %arg3[%c0_5, %c0_6], %16 {strides = array<i32>} : memref<8x1xf32, #tpu.memory_space<vmem>>, vector<8x1xf32>,
    %c0_i32_7 = arith.constant 0 : i32
    %18 = arith.cmpi eq, %arg1, %c0_i32_7 : i32
    %19 = arith.extui %18 : i1 to i32
    %c0_i32_8 = arith.constant 0 : i32
    %20 = arith.cmpi ne, %19, %c0_i32_8 : i32
    scf.if %20 {
      %c0_9 = arith.constant 0 : index
      %c0_10 = arith.constant 0 : index
      %21 = vector.load %arg3[%c0_9, %c0_10] : memref<8x1xf32, #tpu.memory_space<vmem>>, vector<8x1xf32>
      %cst_11 = arith.constant 0.00416666688 : f32
      %22 = vector.broadcast %cst_11 : f32 to vector<8x1xf32>
      %23 = arith.mulf %21, %22 : vector<8x1xf32>
      %c0_12 = arith.constant 0 : index
      %c0_13 = arith.constant 0 : index
      %24 = vector.load %arg3[%c0_12, %c0_13] : memref<8x1xf32, #tpu.memory_space<vmem>>, vector<8x1xf32>
      tpu.vector_store %arg3[%c0_12, %c0_13], %23 {strides = array<i32>} : memref<8x1xf32, #tpu.memory_space<vmem>>, vector<8x1xf32>,
    } else {
    }
    return
  }
  func.func @transform_0(%arg0: i32, %arg1: i32) -> (i32, i32) {
    %c0_i32 = arith.constant 0 : i32
    return %arg0, %arg1 : i32, i32
  }
  func.func @transform_1(%arg0: i32, %arg1: i32) -> (i32, i32) {
    %c0_i32 = arith.constant 0 : i32
    %c0_i32_0 = arith.constant 0 : i32
    return %arg0, %c0_i32 : i32, i32
  }
}

</mosaic_0001>

<bundles_post_ra>
// kernel: tpu_custom_call.1
= control target key start
LH: loop header
LB: loop body
LE: loop exit
PB: predicated region body
PF: predicated region fallthrough
CT: control target
= control target key end

     0   :  { %6 = vsyncpa [#allocation3], 0  ;;  %s84_s6 = smov [#allocation2]   ;;  %s117_s0 = inlined_call_operand.hbm [shape: f32[8,240], index: 0, kind: input, shape index: {}]   ;;  %s118_s1 = inlined_call_operand.vmem [shape: f32[8,1], index: 1, kind: output, shape index: {}]  }
   0x1   :  { %s13_s7 = sshll.u32 %s84_s6, 4  ;;  %s14_s7 = int_to_ptr.vmem [resolvable:$true] %s13_s7 }
   0x2   :  { %s70_s8 = scalar_lea.vmem %s14_s7, 256  ;;  %p75_p1 = scmp.lt.s32.totalorder %s14_s7, %s14_s7 }
   0x3   :  { %p71_p0 = scmp.ne.s32.totalorder %s14_s7, %s70_s8  ;;  %p76_p2 = scmp.lt.s32.totalorder %s70_s8, %s70_s8 }
   0x5   :  { %p77_p3 = por %p76_p2, %p75_p1 }
   0x7   :  { %p78_p4 = pnand %p77_p3, %p71_p0 }
   0x9   :  { %81 = shalt.err (!%p78_p4)
}
   0xa   :  { %16 = dma.hbm_to_vmem [thread:$0]  %s117_s0, 256, %s14_s7, [#allocation3]  }
   0xb   :  { %82 = dma.done.wait [#allocation3], 256  }
   0xc   :  { %83 = vsyncadd [#allocation3], 4294967040  ;;  %vm24_vm0 = vcmask 7168   ;;  %v28_v0 = vlaneseq  ;;  %v85_v1 = vmov 0.0   ;;  %v26_v4 = vld [vmem:[#allocation2] sm:$0xff]  ;;  %v27_v5 = vld [vmem:[#allocation2 + $0x8] sm:$0xff] }
   0xd   :  { %25 = vst.msk [vmem:[%s118_s1] sm:$0xff] %vm24_vm0, %v85_v1 }
   0xe   :  { %v29_v2 = vand.u32 127, %v28_v0 }
  0x10   :  { %v30_v3 = vadd.s32 128, %v29_v2 }
  0x12   :  { %vm35_vm1 = vcmp.lt.s32.totalorder %v30_v3, 240 }
  0x13   :  { %v41_v6 = vsel %vm35_vm1, %v27_v5, 0.0 }
  0x14   :  { %v43_v7 = vadd.f32 %v41_v6, %v26_v4  ;;  %v42_v8 = vld [vmem:[%s118_s1] sm:$0xff] }
  0x16   :  { %44 = vadd.xlane.f32.xlu0 %v43_v7 }
  0x9f   :  { %v45_v9 = vpop.xlane.xlu0 %44 }
  0xa0   :  { %v46_v10 = vadd.f32 %v45_v9, %v42_v8 }
  0xa2   :  { %48 = vst.msk [vmem:[%s118_s1] sm:$0xff] %vm24_vm0, %v46_v10 }
  0xa9   :  { %v52_v11 = vld [vmem:[%s118_s1] sm:$0xff] }
  0xaa   :  { %v53_v12 = vmul.f32 0.004166667, %v52_v11 }
  0xac   :  { %54 = vst.msk [vmem:[%s118_s1] sm:$0xff] %vm24_vm0, %v53_v12 }
  0xad   :  { %59 = vsyncpa [#allocation3], 1 }

</bundles_post_ra>
